<compile_context>
chip_gen: v7x
topology: tpu7x:2x2x1
jax: 0.10.0
libtpu: 0.0.40
codegen_flags: <defaults>
</compile_context>

<pallas_src>
import functools

import jax
import jax.numpy as jnp
from jax import lax
from jax.experimental import pallas as pl
from jax.experimental.pallas import tpu as pltpu


# --------------------------------------------------------------------------- #
# Kernel 1: fused QKV projection (one pass over x), head-major outputs.
# --------------------------------------------------------------------------- #
def _qkv_proj_kernel(x_ref, wq_ref, wk_ref, wv_ref, q_ref, k_ref, v_ref):
    """Grid = (batch, s-tile, head).

      x_ref  : (1, ts, H)      input tile
      wq_ref : (1, H, d)       per-head W_query^T (1/sqrt(d) pre-folded)
      wk_ref : (1, H, d)       per-head W_key^T
      wv_ref : (1, H, d)       per-head W_value^T
      q_ref  : (1, 1, ts, d)   output blocks of (B, n_head, S, d)
    """
    x = x_ref[0]                                                   # (ts, H)
    q_ref[0, 0] = jnp.dot(x, wq_ref[0],
                          preferred_element_type=jnp.float32).astype(q_ref.dtype)
    k_ref[0, 0] = jnp.dot(x, wk_ref[0],
                          preferred_element_type=jnp.float32).astype(k_ref.dtype)
    v_ref[0, 0] = jnp.dot(x, wv_ref[0],
                          preferred_element_type=jnp.float32).astype(v_ref.dtype)


# --------------------------------------------------------------------------- #
# Kernel 2: flash-style multi-head attention + fused output Linear.
# --------------------------------------------------------------------------- #
def _flash_attn_kernel(q_ref, k_ref, v_ref, wo_ref, bo_ref, o_ref,
                       m_scr, l_scr, acc_scr,
                       *, n_head, mxu_dtype, approx_recip):
    """Grid = (batch, q-tile, kv-tile); kv-tile is innermost ("arbitrary").

      q_ref   : (1, n_head, tq, d)   pre-scaled queries       (mxu dtype)
      k_ref   : (1, n_head, tk, d)   keys                     (mxu dtype)
      v_ref   : (1, n_head, tk, d)   values                   (mxu dtype)
      wo_ref  : (n_head, d, H)       output weight, head-split, pre-transposed
      bo_ref  : (1, H)               output bias              (f32)
      o_ref   : (1, tq, H)           output tile              (x.dtype)

      m_scr   : (n_head, tq, 1)  running max                  (f32)
      l_scr   : (n_head, tq, 1)  running softmax denominator  (f32)
      acc_scr : (n_head, tq, d)  running numerator            (f32)
    """
    ki = pl.program_id(2)
    nk = pl.num_programs(2)

    @pl.when(ki == 0)
    def _init():
        m_scr[...] = jnp.full_like(m_scr, -jnp.inf)
        l_scr[...] = jnp.zeros_like(l_scr)
        acc_scr[...] = jnp.zeros_like(acc_scr)

    def head_step(h, carry):
        q_h = q_ref[0, h]                                          # (tq, d)
        k_h = k_ref[0, h]                                          # (tk, d)
        v_h = v_ref[0, h]                                          # (tk, d)
        # 'NT' scores matmul: contract on d without transposing K.
        s = lax.dot_general(q_h, k_h,
                            dimension_numbers=(((1,), (1,)), ((), ())),
                            preferred_element_type=jnp.float32)    # (tq, tk)
        m_prev = m_scr[h]                                          # (tq, 1)
        m_new = jnp.maximum(m_prev, jnp.max(s, axis=-1, keepdims=True))
        alpha = jnp.exp(m_prev - m_new)
        # TODO(synk): on v6e/v7x (bf16 EUP) this exp could run in bf16 if profiling
        # shows EUP saturation at small d; kept f32 so the same kernel is v5e-safe.
        p = jnp.exp(s - m_new)                                     # f32 softmax math
        l_scr[h] = alpha * l_scr[h] + jnp.sum(p, axis=-1, keepdims=True)
        pv = jnp.dot(p.astype(mxu_dtype), v_h,
                     preferred_element_type=jnp.float32)           # (tq, d)
        acc_scr[h] = alpha * acc_scr[h] + pv
        m_scr[h] = m_new
        return carry

    if n_head <= 4:
        for h in range(n_head):            # tiny head counts: full unroll is fine
            head_step(h, 0)
    else:
        lax.fori_loop(0, n_head, head_step, 0)   # bound live ranges for many heads

    @pl.when(ki == nk - 1)
    def _finalize():
        tq = o_ref.shape[1]
        hidden = o_ref.shape[2]

        def out_step(h, out):
            inv = pl.reciprocal(l_scr[h], approx=approx_recip)     # EUP, not VALU
            head = (acc_scr[h] * inv).astype(mxu_dtype)            # (tq, d)
            return out + jnp.dot(head, wo_ref[h],
                                 preferred_element_type=jnp.float32)

        out = jnp.zeros((tq, hidden), jnp.float32)
        if n_head <= 4:
            for h in range(n_head):
                out = out_step(h, out)
        else:
            out = lax.fori_loop(0, n_head, out_step, out)
        o_ref[0] = (out + bo_ref[...]).astype(o_ref.dtype)         # one (tq, H) store


# --------------------------------------------------------------------------- #
# Wrapper
# --------------------------------------------------------------------------- #
def _pick_tile(dim, cap, quantum):
    """Largest tile <= cap that divides `dim` and is a multiple of `quantum`
    (16 for bf16 sublane packing, 8 for f32).  Small dims use the full dim."""
    if dim <= cap:
        return dim
    start = cap - (cap % quantum)
    for t in range(start, quantum - 1, -quantum):
        if dim % t == 0:
            return t
    # TODO(synk): pad + mask awkward S instead of falling back to a full-S tile.
    return dim


def self_attention(x, w_query, w_key, w_value, w_out, b_out, *, n_head,
                   mxu_dtype=jnp.bfloat16, q_tile=256, kv_tile=512, proj_tile=256,
                   vmem_limit_bytes=64 * 1024 * 1024):
    """Pallas TPU forward for the PyTorch Self_Attention module.

    x                     : (B, S, H)
    w_query/w_key/w_value : (n_head, d_per_head, H)   (torch layout)
    w_out                 : (H, H)  (torch nn.Linear weight, (out, in))
    b_out                 : (H,)

    Note: on v5e/v6e (128 MiB VMEM) vmem_limit_bytes can be raised to ~96-100 MiB
    and kv_tile to 1024 for fewer grid steps; 64 MiB is the safe v7x ceiling.
    """
    B, S, H = x.shape
    d = H // n_head
    out_dtype = x.dtype
    approx_recip = (mxu_dtype != jnp.float32)
    scale = 1.0 / (d ** 0.5)
    quantum = 16 if mxu_dtype == jnp.bfloat16 else 8

    # ---- wrapper-side layout plumbing (free) -------------------------------
    # Per-head pre-transposed projection weights; fold 1/sqrt(d) into Wq once.
    wq_t = (jnp.transpose(w_query, (0, 2, 1)) * scale).astype(mxu_dtype)  # (nh,H,d)
    wk_t = jnp.transpose(w_key, (0, 2, 1)).astype(mxu_dtype)              # (nh,H,d)
    wv_t = jnp.transpose(w_value, (0, 2, 1)).astype(mxu_dtype)            # (nh,H,d)
    # multi @ W_out.T  ==  sum_h head_h @ (W_out.T)[h*d:(h+1)*d, :]
    wo_t = jnp.transpose(w_out).reshape(n_head, d, H).astype(mxu_dtype)   # (nh,d,H)
    bo = b_out.reshape(1, H).astype(jnp.float32)
    xc = x.astype(mxu_dtype)

    # ---- pass 1: QKV projection (once per token — hoisted out of the kv loop) ----
    ts = _pick_tile(S, proj_tile, quantum)
    ns = S // ts
    qkv_shape = jax.ShapeDtypeStruct((B, n_head, S, d), mxu_dtype)
    q, k, v = pl.pallas_call(
        _qkv_proj_kernel,
        out_shape=(qkv_shape, qkv_shape, qkv_shape),
        grid_spec=pltpu.PrefetchScalarGridSpec(
            num_scalar_prefetch=0,
            grid=(B, ns, n_head),
            in_specs=[
                pl.BlockSpec((1, ts, H), lambda b, si, h: (b, si, 0)),   # x tile
                pl.BlockSpec((1, H, d), lambda b, si, h: (h, 0, 0)),     # Wq^T (scaled)
                pl.BlockSpec((1, H, d), lambda b, si, h: (h, 0, 0)),     # Wk^T
                pl.BlockSpec((1, H, d), lambda b, si, h: (h, 0, 0)),     # Wv^T
            ],
            out_specs=[
                pl.BlockSpec((1, 1, ts, d), lambda b, si, h: (b, h, si, 0)),
                pl.BlockSpec((1, 1, ts, d), lambda b, si, h: (b, h, si, 0)),
                pl.BlockSpec((1, 1, ts, d), lambda b, si, h: (b, h, si, 0)),
            ],
        ),
        compiler_params=pltpu.CompilerParams(
            dimension_semantics=("parallel", "parallel", "parallel"),
            vmem_limit_bytes=vmem_limit_bytes,
        ),
    )(xc, wq_t, wk_t, wv_t)

    # ---- pass 2: flash attention + fused output Linear ---------------------
    tq = _pick_tile(S, q_tile, quantum)
    tk = _pick_tile(S, kv_tile, quantum)
    nq, nk = S // tq, S // tk

    kernel = functools.partial(_flash_attn_kernel, n_head=n_head,
                               mxu_dtype=mxu_dtype, approx_recip=approx_recip)

    return pl.pallas_call(
        kernel,
        out_shape=jax.ShapeDtypeStruct((B, S, H), out_dtype),
        grid_spec=pltpu.PrefetchScalarGridSpec(
            num_scalar_prefetch=0,
            grid=(B, nq, nk),
            in_specs=[
                pl.BlockSpec((1, n_head, tq, d), lambda b, qi, ki: (b, 0, qi, 0)),  # Q
                pl.BlockSpec((1, n_head, tk, d), lambda b, qi, ki: (b, 0, ki, 0)),  # K
                pl.BlockSpec((1, n_head, tk, d), lambda b, qi, ki: (b, 0, ki, 0)),  # V
                pl.BlockSpec((n_head, d, H), lambda b, qi, ki: (0, 0, 0)),          # Wo^T
                pl.BlockSpec((1, H), lambda b, qi, ki: (0, 0)),                     # bias
            ],
            out_specs=pl.BlockSpec((1, tq, H), lambda b, qi, ki: (b, qi, 0)),
            scratch_shapes=[
                pltpu.VMEM((n_head, tq, 1), jnp.float32),   # running max
                pltpu.VMEM((n_head, tq, 1), jnp.float32),   # running denominator
                pltpu.VMEM((n_head, tq, d), jnp.float32),   # running numerator
            ],
        ),
        compiler_params=pltpu.CompilerParams(
            dimension_semantics=("parallel", "parallel", "arbitrary"),
            vmem_limit_bytes=vmem_limit_bytes,
        ),
    )(q, k, v, wo_t, bo)


def reference_self_attention(x, w_query, w_key, w_value, w_out, b_out, *, n_head):
    """Pure-JAX reference mirroring the PyTorch forward (f32)."""
    B, S, H = x.shape
    d = H // n_head
    heads = []
    for i in range(n_head):
        q = x @ w_query[i].T
        k = x @ w_key[i].T
        v = x @ w_value[i].T
        scores = q @ jnp.swapaxes(k, -2, -1) / (d ** 0.5)
        attn = jax.nn.softmax(scores, axis=-1)
        heads.append(attn @ v)
    multi = jnp.concatenate(heads, axis=-1)
    return multi @ w_out.T + b_out


if __name__ == "__main__":
    # Small shapes consistent with the module's forward: (batch, seq, hidden)
    B, S, H = 2, 8, 32
    N_HEAD = 2
    D = H // N_HEAD

    key = jax.random.PRNGKey(0)
    kx, kq, kk, kv, kw, kb = jax.random.split(key, 6)

    # Parameter shapes match the PyTorch __init__:
    #   W_query / W_key / W_value: (n_head, d_per_head, hidden), uniform [0,1)
    #   output_layer: Linear(hidden, hidden) -> weight (H, H), bias (H,)
    x = jax.random.normal(kx, (B, S, H), dtype=jnp.float32)
    w_query = jax.random.uniform(kq, (N_HEAD, D, H), dtype=jnp.float32)
    w_key = jax.random.uniform(kk, (N_HEAD, D, H), dtype=jnp.float32)
    w_value = jax.random.uniform(kv, (N_HEAD, D, H), dtype=jnp.float32)
    bound = 1.0 / (H ** 0.5)
    w_out = jax.random.uniform(kw, (H, H), dtype=jnp.float32,
                               minval=-bound, maxval=bound)
    b_out = jax.random.uniform(kb, (H,), dtype=jnp.float32,
                               minval=-bound, maxval=bound)

    ref = reference_self_attention(x, w_query, w_key, w_value, w_out, b_out,
                                   n_head=N_HEAD)

    # 1) Exact-precision path (f32 MXU operands): tight correctness check.
    out_f32 = self_attention(x, w_query, w_key, w_value, w_out, b_out,
                             n_head=N_HEAD, mxu_dtype=jnp.float32)
    out_f32 = jax.block_until_ready(out_f32)
    assert out_f32.shape == (B, S, H)
    assert jnp.allclose(out_f32, ref, atol=2e-4, rtol=2e-4), "f32 Pallas kernel mismatch"

    # 2) Performance path (bf16 MXU operands, f32 accumulation): loose sanity check.
    out_bf16 = self_attention(x, w_query, w_key, w_value, w_out, b_out,
                              n_head=N_HEAD, mxu_dtype=jnp.bfloat16)
    out_bf16 = jax.block_until_ready(out_bf16)
    assert out_bf16.shape == (B, S, H)
    rel_err = jnp.max(jnp.abs(out_bf16 - ref)) / (jnp.max(jnp.abs(ref)) + 1e-6)
    assert float(rel_err) < 0.1, f"bf16 Pallas kernel mismatch (rel_err={float(rel_err)})"

    print("KERNEL_OK")
</pallas_src>

<mosaic_0001>
module attributes {stable_mosaic.version = 11 : i64} {
  func.func @_qkv_proj_kernel(%arg0: i32, %arg1: i32, %arg2: i32, %arg3: memref<1x8x32xf32, #tpu.memory_space<vmem>>, %arg4: memref<1x32x16xf32, #tpu.memory_space<vmem>>, %arg5: memref<1x32x16xf32, #tpu.memory_space<vmem>>, %arg6: memref<1x32x16xf32, #tpu.memory_space<vmem>>, %arg7: memref<1x1x8x16xf32, #tpu.memory_space<vmem>>, %arg8: memref<1x1x8x16xf32, #tpu.memory_space<vmem>>, %arg9: memref<1x1x8x16xf32, #tpu.memory_space<vmem>>) attributes {dimension_semantics = [#tpu.dimension_semantics<parallel>, #tpu.dimension_semantics<parallel>, #tpu.dimension_semantics<parallel>], iteration_bounds = array<i64: 2, 1, 2>, scalar_prefetch = 0 : i64, scratch_operands = 0 : i64, tpu.core_type = #tpu.core_type<tc>, window_params = [{transform_indices = @transform_0, window_bounds = array<i64: 1, 8, 32>}, {transform_indices = @transform_1, window_bounds = array<i64: 1, 32, 16>}, {transform_indices = @transform_2, window_bounds = array<i64: 1, 32, 16>}, {transform_indices = @transform_3, window_bounds = array<i64: 1, 32, 16>}, {transform_indices = @transform_4, window_bounds = array<i64: 1, 1, 8, 16>}, {transform_indices = @transform_5, window_bounds = array<i64: 1, 1, 8, 16>}, {transform_indices = @transform_6, window_bounds = array<i64: 1, 1, 8, 16>}]} {
    %c0 = arith.constant 0 : index
    %c0_0 = arith.constant 0 : index
    %c0_1 = arith.constant 0 : index
    %0 = vector.load %arg3[%c0, %c0_0, %c0_1] : memref<1x8x32xf32, #tpu.memory_space<vmem>>, vector<1x8x32xf32>
    %1 = vector.shape_cast %0 : vector<1x8x32xf32> to vector<8x32xf32>
    %c0_2 = arith.constant 0 : index
    %c0_3 = arith.constant 0 : index
    %c0_4 = arith.constant 0 : index
    %2 = vector.load %arg4[%c0_2, %c0_3, %c0_4] : memref<1x32x16xf32, #tpu.memory_space<vmem>>, vector<1x32x16xf32>
    %3 = vector.shape_cast %2 : vector<1x32x16xf32> to vector<32x16xf32>
    %cst = arith.constant dense<0.000000e+00> : vector<8x16xf32>
    %4 = tpu.matmul %1, %3, %cst {dimension_numbers = #tpu.dot_dimension_numbers<[1], [0], [0], [1], [0, 0, 1, 1], [], []>} : vector<8x32xf32>, vector<32x16xf32>, vector<8x16xf32> -> vector<8x16xf32>
    %c0_5 = arith.constant 0 : index
    %c0_6 = arith.constant 0 : index
    %c0_7 = arith.constant 0 : index
    %c0_8 = arith.constant 0 : index
    %5 = vector.load %arg7[%c0_5, %c0_6, %c0_7, %c0_8] : memref<1x1x8x16xf32, #tpu.memory_space<vmem>>, vector<1x1x8x16xf32>
    %6 = vector.shape_cast %5 : vector<1x1x8x16xf32> to vector<8x16xf32>
    %7 = vector.shape_cast %4 : vector<8x16xf32> to vector<1x1x8x16xf32>
    tpu.vector_store %arg7[%c0_5, %c0_6, %c0_7, %c0_8], %7 {strides = array<i32>} : memref<1x1x8x16xf32, #tpu.memory_space<vmem>>, vector<1x1x8x16xf32>,
    %c0_9 = arith.constant 0 : index
    %c0_10 = arith.constant 0 : index
    %c0_11 = arith.constant 0 : index
    %8 = vector.load %arg5[%c0_9, %c0_10, %c0_11] : memref<1x32x16xf32, #tpu.memory_space<vmem>>, vector<1x32x16xf32>
    %9 = vector.shape_cast %8 : vector<1x32x16xf32> to vector<32x16xf32>
    %cst_12 = arith.constant dense<0.000000e+00> : vector<8x16xf32>
    %10 = tpu.matmul %1, %9, %cst_12 {dimension_numbers = #tpu.dot_dimension_numbers<[1], [0], [0], [1], [0, 0, 1, 1], [], []>} : vector<8x32xf32>, vector<32x16xf32>, vector<8x16xf32> -> vector<8x16xf32>
    %c0_13 = arith.constant 0 : index
    %c0_14 = arith.constant 0 : index
    %c0_15 = arith.constant 0 : index
    %c0_16 = arith.constant 0 : index
    %11 = vector.load %arg8[%c0_13, %c0_14, %c0_15, %c0_16] : memref<1x1x8x16xf32, #tpu.memory_space<vmem>>, vector<1x1x8x16xf32>
    %12 = vector.shape_cast %11 : vector<1x1x8x16xf32> to vector<8x16xf32>
    %13 = vector.shape_cast %10 : vector<8x16xf32> to vector<1x1x8x16xf32>
    tpu.vector_store %arg8[%c0_13, %c0_14, %c0_15, %c0_16], %13 {strides = array<i32>} : memref<1x1x8x16xf32, #tpu.memory_space<vmem>>, vector<1x1x8x16xf32>,
    %c0_17 = arith.constant 0 : index
    %c0_18 = arith.constant 0 : index
    %c0_19 = arith.constant 0 : index
    %14 = vector.load %arg6[%c0_17, %c0_18, %c0_19] : memref<1x32x16xf32, #tpu.memory_space<vmem>>, vector<1x32x16xf32>
    %15 = vector.shape_cast %14 : vector<1x32x16xf32> to vector<32x16xf32>
    %cst_20 = arith.constant dense<0.000000e+00> : vector<8x16xf32>
    %16 = tpu.matmul %1, %15, %cst_20 {dimension_numbers = #tpu.dot_dimension_numbers<[1], [0], [0], [1], [0, 0, 1, 1], [], []>} : vector<8x32xf32>, vector<32x16xf32>, vector<8x16xf32> -> vector<8x16xf32>
    %c0_21 = arith.constant 0 : index
    %c0_22 = arith.constant 0 : index
    %c0_23 = arith.constant 0 : index
    %c0_24 = arith.constant 0 : index
    %17 = vector.load %arg9[%c0_21, %c0_22, %c0_23, %c0_24] : memref<1x1x8x16xf32, #tpu.memory_space<vmem>>, vector<1x1x8x16xf32>
    %18 = vector.shape_cast %17 : vector<1x1x8x16xf32> to vector<8x16xf32>
    %19 = vector.shape_cast %16 : vector<8x16xf32> to vector<1x1x8x16xf32>
    tpu.vector_store %arg9[%c0_21, %c0_22, %c0_23, %c0_24], %19 {strides = array<i32>} : memref<1x1x8x16xf32, #tpu.memory_space<vmem>>, vector<1x1x8x16xf32>,
    return
  }
  func.func @transform_0(%arg0: i32, %arg1: i32, %arg2: i32) -> (i32, i32, i32) {
    %c0_i32 = arith.constant 0 : i32
    %c0_i32_0 = arith.constant 0 : i32
    return %arg0, %arg1, %c0_i32 : i32, i32, i32
  }
  func.func @transform_1(%arg0: i32, %arg1: i32, %arg2: i32) -> (i32, i32, i32) {
    %c0_i32 = arith.constant 0 : i32
    %c0_i32_0 = arith.constant 0 : i32
    %c0_i32_1 = arith.constant 0 : i32
    return %arg2, %c0_i32, %c0_i32_0 : i32, i32, i32
  }
  func.func @transform_2(%arg0: i32, %arg1: i32, %arg2: i32) -> (i32, i32, i32) {
    %c0_i32 = arith.constant 0 : i32
    %c0_i32_0 = arith.constant 0 : i32
    %c0_i32_1 = arith.constant 0 : i32
    return %arg2, %c0_i32, %c0_i32_0 : i32, i32, i32
  }
  func.func @transform_3(%arg0: i32, %arg1: i32, %arg2: i32) -> (i32, i32, i32) {
    %c0_i32 = arith.constant 0 : i32
    %c0_i32_0 = arith.constant 0 : i32
    %c0_i32_1 = arith.constant 0 : i32
    return %arg2, %c0_i32, %c0_i32_0 : i32, i32, i32
  }
  func.func @transform_4(%arg0: i32, %arg1: i32, %arg2: i32) -> (i32, i32, i32, i32) {
    %c0_i32 = arith.constant 0 : i32
    %c0_i32_0 = arith.constant 0 : i32
    return %arg0, %arg2, %arg1, %c0_i32 : i32, i32, i32, i32
  }
  func.func @transform_5(%arg0: i32, %arg1: i32, %arg2: i32) -> (i32, i32, i32, i32) {
    %c0_i32 = arith.constant 0 : i32
    %c0_i32_0 = arith.constant 0 : i32
    return %arg0, %arg2, %arg1, %c0_i32 : i32, i32, i32, i32
  }
  func.func @transform_6(%arg0: i32, %arg1: i32, %arg2: i32) -> (i32, i32, i32, i32) {
    %c0_i32 = arith.constant 0 : i32
    %c0_i32_0 = arith.constant 0 : i32
    return %arg0, %arg2, %arg1, %c0_i32 : i32, i32, i32, i32
  }
}

</mosaic_0001>

<bundles_post_ra>
// kernel: tpu_custom_call.1
= control target key start
LH: loop header
LB: loop body
LE: loop exit
PB: predicated region body
PF: predicated region fallthrough
CT: control target
= control target key end

     0   :  { %s2110_s0 = inlined_call_operand.hbm [shape: f32[2,8,32], index: 0, kind: input, shape index: {}]   ;;  %s2111_s1 = inlined_call_operand.hbm [shape: f32[2,32,16], index: 1, kind: input, shape index: {}]   ;;  %s2112_s2 = inlined_call_operand.hbm [shape: f32[2,32,16], index: 2, kind: input, shape index: {}]   ;;  %s2113_s3 = inlined_call_operand.hbm [shape: f32[2,32,16], index: 3, kind: input, shape index: {}]   ;;  %s2114_s4 = inlined_call_operand.hbm [shape: f32[2,2,8,16], index: 4, kind: output, shape index: {0}]   ;;  %s2115_s5 = inlined_call_operand.hbm [shape: f32[2,2,8,16], index: 5, kind: output, shape index: {1}]   ;;  %s2116_s6 = inlined_call_operand.hbm [shape: f32[2,2,8,16], index: 6, kind: output, shape index: {2}]  }
   0x1   :  { %2142 = sst [smem:[#allocation33_spill]] %s2111_s1 }
   0x2   :  { %2143 = sst [smem:[#allocation34_spill]] %s2114_s4 }
   0x3   :  { %2144 = sst [smem:[#allocation35_spill]] %s2115_s5 }
   0x4   :  { %2145 = sst [smem:[#allocation36_spill]] %s2116_s6 }
   0x5   :  { %12 = vsyncpa [#allocation3], 0 }
   0x6   :  { %14 = vsyncpa [#allocation3 + $0x1], 0 }
   0x7   :  { %15 = vsyncpa [#allocation6], 0 }
   0x8   :  { %17 = vsyncpa [#allocation6 + $0x1], 0 }
   0x9   :  { %18 = vsyncpa [#allocation9], 0 }
   0xa   :  { %20 = vsyncpa [#allocation9 + $0x1], 0 }
   0xb   :  { %21 = vsyncpa [#allocation4], 0 }
   0xc   :  { %23 = vsyncpa [#allocation4 + $0x1], 0 }
   0xd   :  { %24 = vsyncpa [#allocation12], 0 }
   0xe   :  { %26 = vsyncpa [#allocation12 + $0x1], 0  ;;  %s1592_s21 = smov 0   ;;  %s1594_s22 = smov 0  }
   0xf   :  { %s1596_s23 = smov 0   ;;  %s1598_s24 = smov 0  }
  0x10   :  { %s1600_s25 = smov 0   ;;  %s1602_s26 = smov 0  }
  0x11   :  { %s1604_s27 = smov 0   ;;  %s1606_s28 = smov 0  }
  0x12   :  { %s1608_s29 = smov 0   ;;  %s1610_s30 = smov 0  }
  0x13   :  { %s1612_s7 = smov 0   ;;  %s1614_s8 = smov 0  }
  0x14   :  { %s1616_s9 = smov 0   ;;  %s1618_s10 = smov 0  }
  0x15 LB: > { %2146 = sst [smem:[#allocation19_spill]] %s1491_s21  ;;  %p2122_p0 = scmp.eq.s32.totalorder %s1543_s10, 0  ;;  %s1543_s10 = sphi %s1618_s10, %s32_s10   ;;  %s1539_s9 = sphi %s1616_s9, %s2206_s9   ;;  %s1535_s8 = sphi %s1614_s8, %s2205_s8   ;;  %s1531_s7 = sphi %s1612_s7, %s2204_s7   ;;  %s1527_s30 = sphi %s1610_s30, %s2203_s30   ;;  %s1523_s29 = sphi %s1608_s29, %s2214_s29   ;;  %s1519_s28 = sphi %s1606_s28, %s2213_s28   ;;  %s1515_s27 = sphi %s1604_s27, %s2212_s27   ;;  %s1511_s26 = sphi %s1602_s26, %s2211_s26   ;;  %s1507_s25 = sphi %s1600_s25, %s2210_s25   ;;  %s1503_s24 = sphi %s1598_s24, %s2209_s24   ;;  %s1499_s23 = sphi %s1596_s23, %s2199_s23   ;;  %s1495_s22 = sphi %s1594_s22, %s2208_s22   ;;  %s1491_s21 = sphi %s1592_s21, %s2207_s21  }
  0x16   : > { %2147 = sst [smem:[#allocation20_spill]] %s1499_s23  ;;  %p93_p1 = scmp.ne.s32.totalorder %s1511_s26, %s1507_s25 }
  0x17   : > { %2148 = sst [smem:[#allocation21_spill]] %s1523_s29  ;;  %p2121_p2 = scmp.lt.s32.totalorder %s1543_s10, 4 }
  0x18   : > { %2149 = sst [smem:[#allocation22_spill]] %s1527_s30  ;;  %p95_p3 = por %p93_p1, %p2122_p0 }
  0x19   : > { %2150 = sst [smem:[#allocation23_spill]] %s1531_s7  ;;  %s284_s13 = sand.u32 1, %s1543_s10  }
  0x1a   : > { %2151 = sst [smem:[#allocation24_spill]] %s1535_s8  ;;  %s2117_s14 = sand.u32 1, %s1511_s26  }
  0x1b   : > { %2152 = sst [smem:[#allocation25_spill]] %s1539_s9  ;;  %s1674_s15 = sshll.u32 %s2117_s14, 5 }
  0x1c   : > { %s1677_s16 = sshll.u32 %s1535_s8, 9  ;;  %s2153_s1 = sld [smem:[#allocation33_spill]] }
  0x1d   : > { %s288_s20 = scalar_lea.vmem [#allocation5], %s1674_s15  ;;  %p1688_p4 = pnand %p2121_p2, %p95_p3 }
  0x1e   : > { %s295_s12 = sshll.u32 %s288_s20, 4  ;;  %s1694_s14 = scalar_lea.sflag [#allocation6], %s284_s13  ;;  %s1692_s12 = int_to_ptr.vmem [resolvable:$true] %s295_s12 }
  0x1f   : > { %s2154_s11 = scalar_select %p1688_p4, 1, 0 }
  0x20   : > { %p1700_p6 = pneg %p1688_p4 }
  0x22   : > { %s1683_s19 = scalar_lea.hbm %s2153_s1, %s1677_s16  ;;  %s1214_s5 = scalar_lea.hbm %s2153_s1, 1024 }
  0x23   : > { %s1209_s6 = scalar_lea.hbm %s1683_s19, 512  ;;  %p1215_p9 = scmp.lt.u32.totalorder %s1683_s19, %s2153_s1 }
  0x24   : > { %p1210_p5 = scmp.ne.s32.totalorder %s1683_s19, %s1209_s6  ;;  %p1216_p10 = scmp.lt.u32.totalorder %s1214_s5, %s1209_s6 }
  0x25   : > { %p1218_p12 = scmp.lt.u32.totalorder %s1209_s6, %s1683_s19 }
  0x26   : > { %p1212_p7 = pnand %p1700_p6, %p1210_p5  ;;  %p1217_p11 = por %p1216_p10, %p1215_p9 }
  0x28   : > { %p1213_p8 = pneg %p1212_p7  ;;  %p1219_p13 = por %p1218_p12, %p1217_p11 }
  0x2a   : > { %p1220_p1 = pnand %p1219_p13, %p1213_p8 }
  0x2c   : > { %1223 = shalt.err (!%p1220_p1)
}
  0x2d   : > { %s1224_s13 = scalar_lea.vmem %s1692_s12, 512  ;;  %s1545_s18 = smov [#allocation5]  }
  0x2e   : > { %p1225_p3 = scmp.ne.s32.totalorder %s1692_s12, %s1224_s13  ;;  %s1229_s20 = sshll.u32 %s1545_s18, 4  ;;  %s1230_s20 = int_to_ptr.vmem [resolvable:$false] %s1229_s20 }
  0x2f   : > { %s1231_s4 = scalar_lea.vmem %s1230_s20, 1024  ;;  %p1232_p2 = scmp.lt.s32.totalorder %s1692_s12, %s1230_s20 }
  0x30   : > { %p1227_p5 = pnand %p1225_p3, %p1700_p6  ;;  %p1233_p0 = scmp.lt.s32.totalorder %s1231_s4, %s1224_s13 }
  0x32   : > { %p1228_p7 = pneg %p1227_p5  ;;  %p1234_p9 = por %p1233_p0, %p1232_p2 }
  0x34   : > { %p1235_p10 = pnand %p1234_p9, %p1228_p7 }
  0x36   : > { %1238 = shalt.err (!%p1235_p10)
}
  0x37   : > { %s2123_s5 = smov 128   ;;  %s2125_s6 = smov 8  }
  0x38   : > { %1073 = dma.hbm_to_vmem [thread:$0]  (!%p1688_p4), %s1683_s19, 512, %s1692_s12, %s1694_s14, %s2123_s5, %s2123_s5, %s2125_s6  }
  0x39   : > { %p962_p0 = scmp.ge.s32.totalorder %s1543_s10, 1  ;;  %p345_p2 = scmp.lt.s32.totalorder %s1543_s10, 5 }
  0x3a   : > { %s1734_s13 = sadd.s32 4294967295, %s1543_s10   ;;  %s2157_s20 = sadd.s32 1, %s1535_s8 }
  0x3b   : > { %p1729_p8 = pnand %p962_p0, %p345_p2  ;;  %p45_p11 = scmp.ge.s32.totalorder %s2157_s20, 2 }
  0x3c   : > { %s51_s4 = sadd.s32 1, %s1539_s9  ;;  %s60_s1 = sadd.s32 1, %s1523_s29 }
  0x3d   : > { %s2156_s30 = scalar_select %p1729_p8, 1, 0 }
  0x3e   : > { %s2158_s7 = smov %s2157_s20  ;;  %s2218_s4 = smov (!%p45_p11, %s51_s4), %s1539_s9 }
  0x3f   : > { %s2216_s7 = smov (%p45_p11, %s2158_s7), 0  ;;  %p67_p12 = scmp.ne.s32.totalorder %s1523_s29, %s1519_s28 }
  0x40   : > { %2159 = sst [smem:[#allocation26_spill]] %s2216_s7  ;;  %p73_p13 = scmp.ne.s32.totalorder %s1519_s28, %s1515_s27 }
  0x41   : > { %p53_p1 = scmp.ge.s32.totalorder %s2218_s4, 2  ;;  %p74_p3 = scmp.eq.s32.totalorder %s1734_s13, 0 }
  0x42   : > { %p2160_p5 = scmp.eq.s32.totalorder %s1543_s10, 0  ;;  %s83_s19 = ssub.s32 %s1535_s8, %s2216_s7 }
  0x43   : > { %s2220_s4 = smov (%p53_p1, %s2218_s4), 0  ;;  %p1761_p9 = por %p74_p3, %p73_p13 }
  0x44   : > { %p1753_p7 = por %p2160_p5, %p67_p12  ;;  %2162 = sst [smem:[#allocation27_spill]] %s2220_s4 }
  0x45   : > { %s2163_s27 = scalar_select %p1761_p9, 1, 0 }
  0x46   : > { %p84_p10 = scmp.eq.s32.totalorder %s83_s19, 0  ;;  %s55_s20 = ssub.s32 %s1539_s9, %s2220_s4 }
  0x47   : > { %2164 = sst [smem:[#allocation28_spill]] %s2163_s27  ;;  %p99_p0 = scmp.ne.s32.totalorder %s1507_s25, %s1503_s24 }
  0x48   : > { %p58_p2 = scmp.eq.s32.totalorder %s55_s20, 0  ;;  %s163_s5 = sor.u32 %s83_s19, %s55_s20 }
  0x49   : > { %s2165_s6 = sadd.s32 1, %s1511_s26  ;;  %p1777_p11 = por %p99_p0, %p74_p3 }
  0x4a   : > { %s1772_s18 = scalar_select %p84_p10, %s1511_s26, %s2165_s6  }
  0x4b   : > { %s1775_s7 = scalar_select %p58_p2, %s1523_s29, %s60_s1  }
  0x4c   : > { %2166 = sst [smem:[#allocation29_spill]] %s1772_s18  ;;  %p166_p12 = scmp.eq.s32.totalorder %s163_s5, 0 }
  0x4d   : > { %2167 = sst [smem:[#allocation30_spill]] %s1775_s7  ;;  %s168_s27 = sadd.s32 1, %s1499_s23 }
  0x4e   : > { %s2168_s8 = scalar_select %p1777_p11, 1, 0 }
  0x4f   : > { %p178_p13 = scmp.ne.s32.totalorder %s1499_s23, %s1495_s22  ;;  %p179_p1 = scmp.eq.s32.totalorder %s1734_s13, 3 }
  0x50   : > { %s1785_s24 = scalar_select %p166_p12, %s1499_s23, %s168_s27  }
  0x51   : > { %p184_p5 = scmp.ne.s32.totalorder %s1495_s22, %s1491_s21  ;;  %s2170_s19 = sadd.s32 4294967294, %s1543_s10  }
  0x52   : > { %2169 = sst [smem:[#allocation31_spill]] %s1785_s24  ;;  %p185_p10 = scmp.eq.s32.totalorder %s2170_s19, 3 }
  0x53   : > { %s265_s6 = sand.u32 1, %s1523_s29   ;;  %p1793_p2 = por %p179_p1, %p178_p13 }
  0x54   : > { %p1797_p3 = por %p185_p10, %p184_p5  ;;  %s951_s5 = sshll.u32 %s265_s6, 3 }
  0x55   : > { %s2171_s1 = scalar_select %p1793_p2, 1, 0 }
  0x56   : > { %s2172_s20 = scalar_select %p1797_p3, 1, 0 }
  0x57   : > { %s952_s4 = sshll.u32 %s1539_s9, 7  ;;  %s269_s19 = scalar_lea.vmem [#allocation2], %s951_s5 }
  0x58   : > { %2173 = sst [smem:[#allocation32_spill]] %s2172_s20  ;;  %s1805_s27 = scalar_lea.hbm %s2110_s0, %s952_s4 }
  0x59   : > { %s277_s29 = sshll.u32 %s269_s19, 4  ;;  %p2174_p0 = scmp.lt.s32.totalorder %s1543_s10, 4  ;;  %s1807_s29 = int_to_ptr.vmem [resolvable:$true] %s277_s29 }
  0x5a   : > { %s1821_s7 = scalar_lea.hbm %s2112_s2, %s1677_s16  ;;  %s309_s18 = scalar_lea.vmem [#allocation7], %s1674_s15 }
  0x5b   : > { %p1813_p12 = pnand %p2174_p0, %p1753_p7  ;;  %s1824_s4 = sshll.u32 %s309_s18, 4  ;;  %s1852_s4 = int_to_ptr.vmem [resolvable:$true] %s1824_s4 }
  0x5c   : > { %s266_s5 = scalar_lea.sflag [#allocation3], %s265_s6  ;;  %s1239_s19 = scalar_lea.hbm %s1805_s27, 128 }
  0x5d   : > { %p1240_p13 = scmp.ne.s32.totalorder %s1805_s27, %s1239_s19  ;;  %p1241_p1 = pneg %p1813_p12 }
  0x5e   : > { %s1244_s23 = scalar_lea.hbm %s2110_s0, 256  ;;  %p1245_p10 = scmp.lt.u32.totalorder %s1805_s27, %s2110_s0 }
  0x5f   : > { %p1242_p7 = pnand %p1241_p1, %p1240_p13  ;;  %p1246_p0 = scmp.lt.u32.totalorder %s1244_s23, %s1239_s19 }
  0x60   : > { %p1248_p2 = scmp.lt.u32.totalorder %s1239_s19, %s1805_s27 }
  0x61   : > { %p1243_p5 = pneg %p1242_p7  ;;  %p1247_p3 = por %p1246_p0, %p1245_p10 }
  0x63   : > { %p1249_p11 = por %p1248_p2, %p1247_p3 }
  0x65   : > { %p1250_p9 = pnand %p1249_p11, %p1243_p5 }
  0x67   : > { %1253 = shalt.err (!%p1250_p9)
}
  0x68   : > { %s1254_s6 = scalar_lea.vmem %s1807_s29, 128  ;;  %s1548_s20 = smov [#allocation2]  }
  0x69   : > { %p1255_p13 = scmp.ne.s32.totalorder %s1807_s29, %s1254_s6  ;;  %s1259_s18 = sshll.u32 %s1548_s20, 4  ;;  %s1260_s18 = int_to_ptr.vmem [resolvable:$false] %s1259_s18 }
  0x6a   : > { %s1261_s21 = scalar_lea.vmem %s1260_s18, 256  ;;  %p1262_p4 = scmp.lt.s32.totalorder %s1807_s29, %s1260_s18 }
  0x6b   : > { %p1257_p7 = pnand %p1255_p13, %p1241_p1  ;;  %p1263_p10 = scmp.lt.s32.totalorder %s1261_s21, %s1254_s6 }
  0x6d   : > { %p1258_p8 = pneg %p1257_p7  ;;  %p1264_p0 = por %p1263_p10, %p1262_p4 }
  0x6f   : > { %p1265_p2 = pnand %p1264_p0, %p1258_p8 }
  0x71   : > { %1268 = shalt.err (!%p1265_p2)
}
  0x72   : > { %1070 = dma.hbm_to_vmem [thread:$0]  (!%p1813_p12), %s1805_s27, 128, %s1807_s29, %s266_s5  }
  0x73   : > { %s1269_s19 = scalar_lea.hbm %s1821_s7, 512  ;;  %s1274_s24 = scalar_lea.hbm %s2112_s2, 1024 }
  0x74   : > { %p1270_p9 = scmp.ne.s32.totalorder %s1821_s7, %s1269_s19  ;;  %p1275_p8 = scmp.lt.u32.totalorder %s1821_s7, %s2112_s2 }
  0x75   : > { %p1276_p3 = scmp.lt.u32.totalorder %s1274_s24, %s1269_s19  ;;  %p1278_p5 = scmp.lt.u32.totalorder %s1269_s19, %s1821_s7 }
  0x76   : > { %p1272_p11 = pnand %p1270_p9, %p1700_p6 }
  0x77   : > { %p1277_p1 = por %p1276_p3, %p1275_p8 }
  0x78   : > { %p1273_p4 = pneg %p1272_p11 }
  0x79   : > { %p1279_p13 = por %p1278_p5, %p1277_p1 }
  0x7b   : > { %p1280_p12 = pnand %p1279_p13, %p1273_p4 }
  0x7d   : > { %1283 = shalt.err (!%p1280_p12)
}
  0x7e   : > { %s1284_s29 = scalar_lea.vmem %s1852_s4, 512  ;;  %s1549_s27 = smov [#allocation7]  }
  0x7f   : > { %p1285_p7 = scmp.ne.s32.totalorder %s1852_s4, %s1284_s29  ;;  %s1289_s5 = sshll.u32 %s1549_s27, 4  ;;  %s1290_s5 = int_to_ptr.vmem [resolvable:$false] %s1289_s5 }
  0x80   : > { %s1291_s20 = scalar_lea.vmem %s1290_s5, 1024  ;;  %p1292_p2 = scmp.lt.s32.totalorder %s1852_s4, %s1290_s5 }
  0x81   : > { %p1287_p10 = pnand %p1285_p7, %p1700_p6  ;;  %p1293_p9 = scmp.lt.s32.totalorder %s1291_s20, %s1284_s29 }
  0x83   : > { %p1288_p0 = pneg %p1287_p10  ;;  %p1294_p11 = por %p1293_p9, %p1292_p2 }
  0x85   : > { %p1295_p8 = pnand %p1294_p11, %p1288_p0 }
  0x87   : > { %1298 = shalt.err (!%p1295_p8)
}
  0x88   : > { %p2176_p4 = scmp.ne.s32.totalorder %s2154_s11, 0  ;;  %s2177_s18 = smov 8  }
  0x89   : > { %s2178_s21 = smov 128   ;;  %s1883_s23 = scalar_lea.hbm %s2113_s3, %s1677_s16 }
  0x8a   : > { %1076 = dma.hbm_to_vmem [thread:$0]  (!%p2176_p4), %s1821_s7, 512, %s1852_s4, %s1694_s14, %s2178_s21, %s2178_s21, %s2177_s18  }
  0x8b   : > { %s330_s24 = scalar_lea.vmem [#allocation8], %s1674_s15  ;;  %s2179_s6 = sand.u32 1, %s1511_s26  }
  0x8c   : > { %s337_s9 = sshll.u32 %s330_s24, 4  ;;  %s1890_s29 = scalar_lea.sflag [#allocation9], %s2179_s6  ;;  %s1886_s9 = int_to_ptr.vmem [resolvable:$true] %s337_s9 }
  0x8d   : > { %s1299_s27 = scalar_lea.hbm %s1883_s23, 512  ;;  %s1304_s16 = scalar_lea.hbm %s2113_s3, 1024 }
  0x8e   : > { %p1300_p3 = scmp.ne.s32.totalorder %s1883_s23, %s1299_s27  ;;  %p1305_p13 = scmp.lt.u32.totalorder %s1883_s23, %s2113_s3 }
  0x8f   : > { %p1306_p12 = scmp.lt.u32.totalorder %s1304_s16, %s1299_s27  ;;  %p1308_p10 = scmp.lt.u32.totalorder %s1299_s27, %s1883_s23 }
  0x90   : > { %p1302_p1 = pnand %p1300_p3, %p1700_p6 }
  0x91   : > { %p1307_p7 = por %p1306_p12, %p1305_p13 }
  0x92   : > { %p1303_p5 = pneg %p1302_p1 }
  0x93   : > { %p1309_p0 = por %p1308_p10, %p1307_p7 }
  0x95   : > { %p1310_p2 = pnand %p1309_p0, %p1303_p5 }
  0x97   : > { %1313 = shalt.err (!%p1310_p2)
}
  0x98   : > { %s1314_s15 = scalar_lea.vmem %s1886_s9, 512  ;;  %s1550_s20 = smov [#allocation8]  }
  0x99   : > { %p1315_p9 = scmp.ne.s32.totalorder %s1886_s9, %s1314_s15  ;;  %s1319_s19 = sshll.u32 %s1550_s20, 4  ;;  %s1320_s19 = int_to_ptr.vmem [resolvable:$false] %s1319_s19 }
  0x9a   : > { %s1321_s12 = scalar_lea.vmem %s1320_s19, 1024  ;;  %p1322_p3 = scmp.lt.s32.totalorder %s1886_s9, %s1320_s19 }
  0x9b   : > { %p1317_p11 = pnand %p1315_p9, %p1700_p6  ;;  %p1323_p1 = scmp.lt.s32.totalorder %s1321_s12, %s1314_s15 }
  0x9d   : > { %p1318_p8 = pneg %p1317_p11  ;;  %p1324_p13 = por %p1323_p1, %p1322_p3 }
  0x9f   : > { %p1325_p12 = pnand %p1324_p13, %p1318_p8 }
  0xa1   : > { %1328 = shalt.err (!%p1325_p12)
}
  0xa2   : > { %1079 = dma.hbm_to_vmem [thread:$0]  (!%p2176_p4), %s1883_s23, 512, %s1886_s9, %s1890_s29, %s2178_s21, %s2178_s21, %s2177_s18  }
  0xa3   : > { %p2180_p6 = scmp.ne.s32.totalorder %s2156_s30, 0 }
  0xa4   : > { %s2181_s17 = sld [smem:[#allocation28_spill]] (!%p2180_p6)  ;;  %s351_s24 = sand.u32 (!%p2180_p6), 1, %s1519_s28  }
  0xa5   : > { %349 = sbr.rel (%p2180_p6) target bundleno = 466 (0x1d2), region = 36  ;;  %s1920_s6 = sshll.u32 (!%p2180_p6), %s351_s24, 3 }
  0xa6   : > { %s352_s27 = scalar_lea.sflag (!%p2180_p6), [#allocation3], %s351_s24  ;;  %s355_s14 = scalar_lea.vmem (!%p2180_p6), [#allocation2], %s1920_s6 }
  0xaa   : > { %p2182_p5 = scmp.ne.s32.totalorder (!%p2180_p6), %s2181_s17, 0 }
  0xac   : > { %1470 = dma.done.wait (%p2182_p5), %s352_s27, 128  }
  0xad   : > { %1472 = vsyncadd (%p2182_p5), %s352_s27, 4294967168  ;;  %s360_s11 = sand.u32 1, %s1734_s13   ;;  %s362_s30 = sand.u32 1, %s1507_s25  }
  0xae   : > { %s964_s18 = sshll.u32 %s362_s30, 5  ;;  %s361_s21 = scalar_lea.sflag [#allocation6], %s360_s11 }
  0xaf   : > { %s364_s23 = scalar_lea.vmem [#allocation5], %s964_s18  ;;  %p2183_p4 = scmp.ne.s32.totalorder %s2168_s8, 0 }
  0xb1   : > { %1474 = dma.done.wait (%p2183_p4), %s361_s21, 1024  }
  0xb2   : > { %1476 = vsyncadd (%p2183_p4), %s361_s21, 4294966272  ;;  %s373_s9 = scalar_lea.vmem [#allocation7], %s964_s18  ;;  %s379_s29 = scalar_lea.sflag [#allocation9], %s362_s30 }
  0xb3   : > { %s1935_s7 = scalar_lea.vmem [#allocation8], %s964_s18 }
  0xb4   : > { %1478 = dma.done.wait (%p2183_p4), %s379_s29, 512  }
  0xb5   : > { %1480 = vsyncadd (%p2183_p4), %s379_s29, 4294966784  ;;  %v1551_v0 = vmov 0.0|0.0   ;;  %vm1552_vm0 = vmmov 0   ;;  %v1553_v1 = vmov 0.0   ;;  %v437_v2 = vld [vmem:[%s364_s23] sm:$0xff]  ;;  %v438_v3 = vld [vmem:[%s364_s23 + $0x8] sm:$0xff] }
  0xb6   : > { %1035 = vmatprep.subr.bf16.mxu0 %v1551_v0  ;;  %1041 = vmatprep.subr.bf16.mxu1 %v1551_v0  ;;  %v439_v4 = vld [vmem:[%s364_s23 + $0x10] sm:$0xff]  ;;  %v1036_v5 = vpack.c.bf16 %v438_v3, %v437_v2  ;;  %v440_v6 = vld [vmem:[%s364_s23 + $0x18] sm:$0xff]  ;;  %v517_v7 = vld [vmem:[%s373_s9] sm:$0xff]  ;;  %s2184_s8 = sld [smem:[#allocation23_spill]]  ;;  %vm441_vm1 = vcmask 261120   ;;  %s2185_s16 = sld [smem:[#allocation22_spill]] }
  0xb7   : > { %1010 = vmatprep.mubr.msk.f32.mxu0 %vm1552_vm0, %v1553_v1  ;;  %1021 = vmatprep.mubr.msk.f32.mxu1 %vm1552_vm0, %v1553_v1  ;;  %v518_v8 = vld [vmem:[%s373_s9 + $0x8] sm:$0xff]  ;;  %v1039_v10 = vpack.c.bf16 %v440_v6, %v439_v4  ;;  %v519_v11 = vld [vmem:[%s373_s9 + $0x10] sm:$0xff]  ;;  %v520_v12 = vld [vmem:[%s373_s9 + $0x18] sm:$0xff]  ;;  %s419_s4 = sand.u32 1, %s1495_s22   ;;  %vm515_vm2 = vcmask 130048   ;;  %s2186_s30 = sld [smem:[#allocation34_spill]] }
  0xb8   : > { %v1042_v9 = vpack.c.bf16 %v518_v8, %v517_v7  ;;  %1037 = vmatpush3.bf16.msra.mxu0 %v1036_v5  ;;  %v592_v13 = vld [vmem:[%s1935_s7] sm:$0xff]  ;;  %v593_v14 = vld [vmem:[%s1935_s7 + $0x8] sm:$0xff]  ;;  %v1045_v15 = vpack.c.bf16 %v520_v12, %v519_v11  ;;  %v436_v16 = vld [vmem:[%s355_s14] sm:$0xff]  ;;  %s1952_s15 = sshll.u32 %s419_s4, 3  ;;  %s2188_s29 = sld [smem:[#allocation35_spill]] }
  0xb9   : > { %1038 = vmatprep.subr.bf16.mxu0 %v1551_v0  ;;  %v1048_v17 = vpack.c.bf16 %v593_v14, %v592_v13  ;;  %v594_v18 = vld [vmem:[%s1935_s7 + $0x10] sm:$0xff]  ;;  %v595_v19 = vld [vmem:[%s1935_s7 + $0x18] sm:$0xff]  ;;  %s421_s12 = scalar_lea.vmem [#allocation10], %s1952_s15  ;;  %s428_s24 = scalar_lea.vmem [#allocation11], %s1952_s15 }
  0xba   : > { %1043 = vmatpush3.bf16.msra.mxu1 %v1042_v9  ;;  %v1051_v20 = vpack.c.bf16 %v595_v19, %v594_v18  ;;  %s694_s17 = sshll.u32 %s421_s12, 4  ;;  %s710_s6 = sshll.u32 %s428_s24, 4  ;;  %s1965_s17 = int_to_ptr.vmem [resolvable:$true] %s694_s17  ;;  %s1973_s6 = int_to_ptr.vmem [resolvable:$true] %s710_s6 }
  0xbb   : > { %1044 = vmatprep.subr.bf16.mxu1 %v1551_v0  ;;  %p2190_p10 = scmp.ne.s32.totalorder %s2171_s1, 0 }
  0xbc   : > { %1040 = vmatpush3.bf16.msra.mxu0 %v1039_v10  ;;  %s976_s5 = sshll.u32 %s2184_s8, 1  ;;  %s668_s8 = scalar_lea.sflag [#allocation4], %s419_s4 }
  0xbd   : > { %1047 = vmatprep.subr.bf16.mxu0 %v1551_v0  ;;  %s690_s20 = sadd.s32 %s2185_s16, %s976_s5  ;;  %s2187_s18 = smov %s2186_s30 }
  0xbe   : > { %1046 = vmatpush3.bf16.msra.mxu1 %v1045_v15  ;;  %s1955_s19 = sshll.u32 %s690_s20, 7  ;;  %s2189_s16 = smov %s2188_s29 }
  0xbf   : > { %1011 = vmatmul.mubr.msk.f32.vlgmr.msra.gmra.mrb[0].mxu0 %vm441_vm1, %v436_v16  ;;  %s1963_s21 = scalar_lea.hbm %s2186_s30, %s1955_s19  ;;  %s1971_s7 = scalar_lea.hbm %s2188_s29, %s1955_s19 }
  0xc0   : > { %1049 = vmatpush3.bf16.msra.mxu0 %v1048_v17  ;;  %1032 = vmatprep.mubr.msk.f32.mxu0 %vm1552_vm0, %v1553_v1  ;;  %s1329_s5 = scalar_lea.vmem %s1965_s17, 128  ;;  %s1554_s20 = smov [#allocation10]  }
  0xc1   : > { %1022 = vmatmul.mubr.msk.f32.vlgmr.msra.gmra.mrb[0].mxu1 %vm441_vm1, %v436_v16  ;;  %1050 = vmatprep.subr.bf16.mxu0 %v1551_v0  ;;  %p1330_p7 = scmp.ne.s32.totalorder %s1965_s17, %s1329_s5  ;;  %s1333_s27 = sshll.u32 %s1554_s20, 4  ;;  %s1334_s27 = int_to_ptr.vmem [resolvable:$false] %s1333_s27 }
  0xc2   : > { %s1335_s14 = scalar_lea.vmem %s1334_s27, 256  ;;  %p1336_p9 = scmp.lt.s32.totalorder %s1965_s17, %s1334_s27 }
  0xc3   : > { %p1331_p0 = pnand %p1330_p7, %p2190_p10  ;;  %p1337_p11 = scmp.lt.s32.totalorder %s1335_s14, %s1329_s5 }
  0xc4   : > { %1052 = vmatpush3.bf16.msra.mxu0 %v1051_v20 }
  0xc5   : > { %p1332_p2 = pneg %p1331_p0  ;;  %p1338_p8 = por %p1337_p11, %p1336_p9 }
  0xc7   : > { %1033 = vmatmul.mubr.msk.f32.vlgmr.msra.gmra.mrb[2].mxu0 %vm441_vm1, %v436_v16  ;;  %p1339_p3 = pnand %p1338_p8, %p1332_p2 }
 0x192   : > { %v511_v21 = vpop.f32.mrb[0].mxu0 }
 0x193   : > { %516 = vst.msk [vmem:[%s421_s12] sm:$0xff] %vm515_vm2, %v511_v21  ;;  %v1012_v22 = vpop.f32.mrb[1].mxu0 }
 0x194   : > { %v587_v23 = vpop.f32.mrb[0].mxu1 }
 0x195   : > { %591 = vst.msk [vmem:[%s428_s24] sm:$0xff] %vm515_vm2, %v587_v23  ;;  %v1023_v24 = vpop.f32.mrb[1].mxu1 }
 0x196   : > { %1342 = shalt.err (!%p1339_p3)
}
 0x197   : > { %s1343_s4 = scalar_lea.hbm %s1963_s21, 128  ;;  %s1347_s30 = scalar_lea.hbm %s2187_s18, 512 }
 0x198   : > { %p1344_p1 = scmp.ne.s32.totalorder %s1963_s21, %s1343_s4  ;;  %p1348_p6 = scmp.lt.u32.totalorder %s1963_s21, %s2187_s18 }
 0x199   : > { %p1349_p5 = scmp.lt.u32.totalorder %s1347_s30, %s1343_s4  ;;  %p1351_p7 = scmp.lt.u32.totalorder %s1343_s4, %s1963_s21 }
 0x19a   : > { %p1345_p13 = pnand %p1344_p1, %p2190_p10 }
 0x19b   : > { %p1350_p4 = por %p1349_p5, %p1348_p6 }
 0x19c   : > { %p1346_p12 = pneg %p1345_p13 }
 0x19d   : > { %p1352_p0 = por %p1351_p7, %p1350_p4 }
 0x19f   : > { %p1353_p2 = pnand %p1352_p0, %p1346_p12 }
 0x1a1   : > { %1356 = shalt.err (!%p1353_p2)
}
 0x1a2   : > { %1061 = dma.vmem_to_hbm [thread:$0]  (%p2190_p10), %s1965_s17, 128, %s1963_s21, %s668_s8  }
 0x1a3   : > { %s2000_s29 = scalar_lea.sflag [#allocation12], %s360_s11  ;;  %s1357_s5 = scalar_lea.vmem %s1973_s6, 128 }
 0x1a4   : > { %p1358_p9 = scmp.ne.s32.totalorder %s1973_s6, %s1357_s5  ;;  %s1555_s20 = smov [#allocation11]  }
 0x1a5   : > { %s1361_s27 = sshll.u32 %s1555_s20, 4  ;;  %s1362_s27 = int_to_ptr.vmem [resolvable:$false] %s1361_s27 }
 0x1a6   : > { %p1359_p11 = pnand %p1358_p9, %p2190_p10  ;;  %s1363_s14 = scalar_lea.vmem %s1362_s27, 256 }
 0x1a7   : > { %p1364_p3 = scmp.lt.s32.totalorder %s1973_s6, %s1362_s27  ;;  %p1365_p1 = scmp.lt.s32.totalorder %s1363_s14, %s1357_s5 }
 0x1a8   : > { %p1360_p8 = pneg %p1359_p11 }
 0x1a9   : > { %p1366_p13 = por %p1365_p1, %p1364_p3 }
 0x1ab   : > { %p1367_p12 = pnand %p1366_p13, %p1360_p8 }
 0x1ad   : > { %1370 = shalt.err (!%p1367_p12)
}
 0x1ae   : > { %s1371_s13 = scalar_lea.hbm %s1971_s7, 128  ;;  %s1375_s21 = scalar_lea.hbm %s2189_s16, 512 }
 0x1af   : > { %p1372_p6 = scmp.ne.s32.totalorder %s1971_s7, %s1371_s13  ;;  %p1376_p7 = scmp.lt.u32.totalorder %s1971_s7, %s2189_s16 }
 0x1b0   : > { %p1377_p0 = scmp.lt.u32.totalorder %s1375_s21, %s1371_s13  ;;  %p1379_p9 = scmp.lt.u32.totalorder %s1371_s13, %s1971_s7 }
 0x1b1   : > { %p1373_p5 = pnand %p1372_p6, %p2190_p10 }
 0x1b2   : > { %p1378_p2 = por %p1377_p0, %p1376_p7 }
 0x1b3   : > { %p1374_p4 = pneg %p1373_p5 }
 0x1b4   : > { %p1380_p11 = por %p1379_p9, %p1378_p2 }
 0x1b6   : > { %p1381_p8 = pnand %p1380_p11, %p1374_p4 }
 0x1b8   : > { %1384 = shalt.err (!%p1381_p8)
}
 0x1b9   : > { %1062 = dma.vmem_to_hbm [thread:$0]  (%p2190_p10), %s1973_s6, 128, %s1971_s7, %s2000_s29   ;;  %v662_v25 = vpop.f32.mrb[2].mxu0 }
 0x1ba   : > { %s435_s12 = scalar_lea.vmem [#allocation13], %s1952_s15  ;;  %s2191_s9 = sld [smem:[#allocation36_spill]]  ;;  %v1034_v26 = vpop.f32.mrb[3].mxu0 }
 0x1bb   : > { %s726_s24 = sshll.u32 %s435_s12, 4  ;;  %666 = vst.msk [vmem:[%s435_s12] sm:$0xff] %vm515_vm2, %v662_v25  ;;  %s1556_s15 = smov [#allocation13]   ;;  %s2031_s24 = int_to_ptr.vmem [resolvable:$true] %s726_s24 }
 0x1bc   : > { %s1385_s27 = scalar_lea.vmem %s2031_s24, 128  ;;  %s1389_s6 = sshll.u32 %s1556_s15, 4  ;;  %s1390_s6 = int_to_ptr.vmem [resolvable:$false] %s1389_s6 }
 0x1bd   : > { %p1386_p3 = scmp.ne.s32.totalorder %s2031_s24, %s1385_s27  ;;  %s1391_s7 = scalar_lea.vmem %s1390_s6, 256 }
 0x1be   : > { %p1392_p12 = scmp.lt.s32.totalorder %s2031_s24, %s1390_s6  ;;  %p1393_p6 = scmp.lt.s32.totalorder %s1391_s7, %s1385_s27 }
 0x1bf   : > { %p1387_p1 = pnand %p1386_p3, %p2190_p10 }
 0x1c0   : > { %s2192_s5 = smov %s2191_s9  ;;  %s2029_s20 = scalar_lea.hbm %s2191_s9, %s1955_s19 }
 0x1c1   : > { %p1388_p13 = pneg %p1387_p1  ;;  %p1394_p5 = por %p1393_p6, %p1392_p12 }
 0x1c3   : > { %p1395_p4 = pnand %p1394_p5, %p1388_p13 }
 0x1c5   : > { %1398 = shalt.err (!%p1395_p4)
}
 0x1c6   : > { %s1399_s19 = scalar_lea.hbm %s2029_s20, 128  ;;  %s1403_s11 = scalar_lea.hbm %s2192_s5, 512 }
 0x1c7   : > { %p1400_p7 = scmp.ne.s32.totalorder %s2029_s20, %s1399_s19  ;;  %p1404_p9 = scmp.lt.u32.totalorder %s2029_s20, %s2192_s5 }
 0x1c8   : > { %p1405_p11 = scmp.lt.u32.totalorder %s1403_s11, %s1399_s19  ;;  %p1407_p3 = scmp.lt.u32.totalorder %s1399_s19, %s2029_s20 }
 0x1c9   : > { %p1401_p0 = pnand %p1400_p7, %p2190_p10 }
 0x1ca   : > { %p1406_p8 = por %p1405_p11, %p1404_p9 }
 0x1cb   : > { %p1402_p2 = pneg %p1401_p0 }
 0x1cc   : > { %p1408_p1 = por %p1407_p3, %p1406_p8 }
 0x1ce   : > { %p1409_p13 = pnand %p1408_p1, %p1402_p2 }
 0x1d0   : > { %1412 = shalt.err (!%p1409_p13)
}
 0x1d1   : > { %1063 = dma.vmem_to_hbm [thread:$0]  (%p2190_p10), %s2031_s24, 128, %s2029_s20, %s2000_s29  }
 0x1d2 PF: > { %s2193_s8 = sld [smem:[#allocation19_spill]]  ;;  %s2194_s4 = sld [smem:[#allocation32_spill]] }
 0x1d3   : > { %p1091_p12 = scmp.ge.s32.totalorder %s1543_s10, 2 }
 0x1d8   : > { %s738_s12 = sand.u32 1, %s2193_s8   ;;  %p2195_p6 = scmp.ne.s32.totalorder %s2194_s4, 0 }
 0x1d9   : > { %s739_s30 = scalar_lea.sflag [#allocation4], %s738_s12 }
 0x1da   : > { %p1081_p5 = pnand %p1091_p12, %p2195_p6 }
 0x1dc   : > { %1482 = dma.done.wait (!%p1081_p5), %s739_s30, 128  }
 0x1dd   : > { %1484 = vsyncadd (!%p1081_p5), %s739_s30, 4294967168  ;;  %s2196_s23 = sadd.s32 4294967294, %s1543_s10  }
 0x1de   : > { %s747_s9 = sand.u32 1, %s2196_s23  }
 0x1df   : > { %s748_s27 = scalar_lea.sflag [#allocation12], %s747_s9 }
 0x1e0   : > { %1486 = dma.done.wait (!%p1081_p5), %s748_s27, 256  }
 0x1e1   : > { %1488 = vsyncadd (!%p1081_p5), %s748_s27, 4294967040  ;;  %s32_s10 = sadd.s32 1, %s1543_s10   ;;  %s2198_s29 = sld [smem:[#allocation20_spill]] }
 0x1e2   : > { %p2063_p10 = scmp.ge.s32.totalorder %s32_s10, 6   ;;  %s2199_s23 = sld [smem:[#allocation31_spill]] }
 0x1e3   : > { %s2200_s20 = sld [smem:[#allocation29_spill]]  ;;  %s2201_s15 = sld [smem:[#allocation21_spill]] }
 0x1e4   : > { %s2202_s6 = sld [smem:[#allocation30_spill]]  ;;  %s2203_s30 = sld [smem:[#allocation24_spill]] }
 0x1e5   : > { %s2204_s7 = sld [smem:[#allocation25_spill]]  ;;  %s2205_s8 = sld [smem:[#allocation26_spill]] }
 0x1e6   : > { %s2206_s9 = sld [smem:[#allocation27_spill]]  ;;  %s2207_s21 = smov %s1495_s22 }
 0x1e7   : > { %s2208_s22 = smov %s2198_s29  ;;  %s2209_s24 = smov %s1507_s25 }
 0x1e8   : > { %s2210_s25 = smov %s1511_s26  ;;  %s2212_s27 = smov %s1519_s28 }
 0x1e9   : > { %s2211_s26 = smov %s2200_s20  ;;  %s2213_s28 = smov %s2201_s15 }
 0x1ea   : > { %s2214_s29 = smov %s2202_s6  ;;  %31 = sbr.rel (!%p2063_p10) target bundleno = 21 (0x15), region = 150 }
 0x1f1   :  { %762 = vsyncpa [#allocation3], 1 }
 0x1f2   :  { %764 = vsyncpa [#allocation3 + $0x1], 1 }
 0x1f3   :  { %765 = vsyncpa [#allocation6], 1 }
 0x1f4   :  { %767 = vsyncpa [#allocation6 + $0x1], 1 }
 0x1f5   :  { %768 = vsyncpa [#allocation9], 1 }
 0x1f6   :  { %770 = vsyncpa [#allocation9 + $0x1], 1 }
 0x1f7   :  { %771 = vsyncpa [#allocation4], 1 }
 0x1f8   :  { %773 = vsyncpa [#allocation4 + $0x1], 1 }
 0x1f9   :  { %774 = vsyncpa [#allocation12], 1 }
 0x1fa   :  { %776 = vsyncpa [#allocation12 + $0x1], 1 }

</bundles_post_ra>
